<compile_context>
chip_gen: v7x
topology: tpu7x:2x2x1
jax: 0.10.0
libtpu: 0.0.40
codegen_flags: <defaults>
</compile_context>

<pallas_src>
import functools
import math

import numpy as np

import jax
import jax.numpy as jnp
from jax.experimental import pallas as pl
from jax.experimental.pallas import tpu as pltpu


# ----------------------------------------------------------------------------
# Kernels (transposed layout: channels on sublanes, graph nodes on lanes)
# ----------------------------------------------------------------------------
def _face_point_kernel(msgfpT_ref,   # [C_out, n_faces]      bf16 (face messages)
                       AfpT_ref,     # [n_faces, tile_p]      bf16 (A_facePoint^T)
                       WppT_ref,     # [2*C_out, C_out]       f32  ([W_pp | W_root]^T)
                       bfp_ref,      # [C_out, 1]             f32
                       bpp_ref,      # [C_out, 1]             f32
                       msgT_ref,     # [C_out, tile_p]        bf16 (pp neighbour msgs)
                       rootT_ref):   # [C_out, tile_p]        f32  (root term + bias)
  f32 = jnp.float32
  c_out = msgT_ref.shape[0]
  # layer 2: face -> point aggregation for this lane tile of points
  x_fp = jnp.dot(msgfpT_ref[...], AfpT_ref[...],
                 preferred_element_type=f32) + bfp_ref[...]
  # layer 3 feature matmuls fused: [W_pp | W_root]^T @ x_fp^T
  m = jnp.dot(WppT_ref[...], x_fp, preferred_element_type=f32)
  msgT_ref[...] = m[:c_out, :].astype(msgT_ref.dtype)
  rootT_ref[...] = m[c_out:, :] + bpp_ref[...]


def _point_point_kernel(kcnt_ref,    # [T]        int32 SMEM (nonzero k-blocks per t)
                        kidx_ref,    # [T*Kmax]   int32 SMEM (block-CSR column ids)
                        msgT_ref,    # [C_out, tile_k]   bf16
                        AppT_ref,    # [tile_k, tile_t]  bf16 (A_pointPoint^T block)
                        rootT_ref,   # [C_out, tile_t]   f32
                        outT_ref,    # [C_out, tile_t]   f32
                        acc_ref):    # [C_out, tile_t]   f32 VMEM accumulator
  t = pl.program_id(0)
  k = pl.program_id(1)

  @pl.when(k == 0)
  def _init():
    acc_ref[...] = jnp.zeros_like(acc_ref)

  # Skip all-zero adjacency blocks entirely (exact: they contribute nothing).
  @pl.when(k < kcnt_ref[t])
  def _accum():
    acc_ref[...] += jnp.dot(msgT_ref[...], AppT_ref[...],
                            preferred_element_type=jnp.float32)

  @pl.when(k == pl.num_programs(1) - 1)
  def _finalize():
    outT_ref[...] = (acc_ref[...] + rootT_ref[...]).astype(outT_ref.dtype)


# ----------------------------------------------------------------------------
# Host-side helpers
# ----------------------------------------------------------------------------
def _round_up(x, m):
  return (x + m - 1) // m * m


def _lcm(a, b):
  return a * b // math.gcd(a, b)


def _build_pp_block_tables(A_pp, npad, tile_t, tile_k):
  """Block-CSR table over (tile_k, tile_t) tiles of the padded A_pp^T."""
  n = A_pp.shape[0]
  At = np.zeros((npad, npad), np.float32)
  At[:n, :n] = np.asarray(A_pp, dtype=np.float32).T
  kb, tb = npad // tile_k, npad // tile_t
  nz = At.reshape(kb, tile_k, tb, tile_t).any(axis=(1, 3))      # [kb, tb]
  kcnt = nz.sum(axis=0).astype(np.int32)                        # [tb]
  kmax = max(int(kcnt.max()), 1)
  kidx = np.zeros((tb, kmax), np.int32)
  for t in range(tb):
    ks = np.flatnonzero(nz[:, t])
    kidx[t, :ks.size] = ks
  return jnp.asarray(kcnt), jnp.asarray(kidx.reshape(-1))


# ----------------------------------------------------------------------------
# Forward
# ----------------------------------------------------------------------------
@functools.partial(jax.jit, static_argnames=("tile_t", "tile_k", "tile_p"))
def _forward_impl(xC, xF, A_cf, A_fp, A_pp, kcnt, kidx, weights,
                  *, tile_t, tile_k, tile_p):
  f32, bf16 = jnp.float32, jnp.bfloat16
  n_points = A_pp.shape[0]
  n_faces = A_fp.shape[1]
  npad = _round_up(n_points, _lcm(_lcm(tile_t, tile_k), tile_p))
  pad = npad - n_points

  W_cf, b_cf = weights["layerCenterFace"]["W"], weights["layerCenterFace"]["b"]
  W_fp, b_fp = weights["layerFacePoint"]["W"], weights["layerFacePoint"]["b"]
  W_pp = weights["layerPointPoint"]["W"]
  W_rt = weights["layerPointPoint"]["W_root"]
  b_pp = weights["layerPointPoint"]["b"]
  c_cf, c_out = W_cf.shape[1], W_pp.shape[1]

  # ---- tiny feature math (layer 1 + layer-2 messages) in plain XLA ---------
  # Concat eliminated via block-decomposed W_fp.
  x_cf = A_cf @ (xC.astype(f32) @ W_cf) + b_cf                 # [n_faces, c_cf]
  msg_fp = x_cf @ W_fp[:c_cf] + xF.astype(f32) @ W_fp[c_cf:]   # [n_faces, c_out]
  msgfpT = msg_fp.T.astype(bf16)                               # [c_out, n_faces]

  # Node-on-lane (transposed), zero-padded, bf16 adjacency (f32 accumulation).
  # TODO(synk): adjacency is static per mesh; precompute/cache these pads and
  # fp8 (v7x) / int8 (v5e, v6e) quantized variants outside the forward pass.
  AfpT = jnp.pad(A_fp.T, ((0, 0), (0, pad))).astype(bf16)      # [n_faces, npad]
  AppT = jnp.pad(A_pp.T, ((0, pad), (0, pad))).astype(bf16)    # [npad, npad]

  WppT = jnp.concatenate([W_pp, W_rt], axis=1).T.astype(f32)   # [2*c_out, c_out]
  bfpT = b_fp.reshape(-1, 1).astype(f32)
  bppT = b_pp.reshape(-1, 1).astype(f32)

  # ---- stage 1: face -> point aggregation + point feature matmuls ----------
  # TODO(synk): for very large face counts, also tile the n_faces contraction
  # axis here instead of keeping AfpT columns whole-height per block.
  msgT, rootT = pl.pallas_call(
      _face_point_kernel,
      out_shape=(jax.ShapeDtypeStruct((c_out, npad), bf16),
                 jax.ShapeDtypeStruct((c_out, npad), f32)),
      grid_spec=pltpu.PrefetchScalarGridSpec(
          num_scalar_prefetch=0,
          grid=(npad // tile_p,),
          in_specs=[
              pl.BlockSpec((c_out, n_faces), lambda p: (0, 0)),
              pl.BlockSpec((n_faces, tile_p), lambda p: (0, p)),
              pl.BlockSpec((2 * c_out, c_out), lambda p: (0, 0)),
              pl.BlockSpec((c_out, 1), lambda p: (0, 0)),
              pl.BlockSpec((c_out, 1), lambda p: (0, 0)),
          ],
          out_specs=[pl.BlockSpec((c_out, tile_p), lambda p: (0, p)),
                     pl.BlockSpec((c_out, tile_p), lambda p: (0, p))],
      ),
      compiler_params=pltpu.CompilerParams(
          dimension_semantics=("parallel",)),
  )(msgfpT, AfpT, WppT, bfpT, bppT)

  # ---- stage 2: block-sparse point -> point aggregation --------------------
  n_t = npad // tile_t
  kmax = kidx.size // n_t

  def _msg_map(t, k, cnt, idx):
    return (0, idx[t * kmax + k])

  def _app_map(t, k, cnt, idx):
    return (idx[t * kmax + k], t)

  def _col_map(t, k, cnt, idx):
    return (0, t)

  outT = pl.pallas_call(
      _point_point_kernel,
      out_shape=jax.ShapeDtypeStruct((c_out, npad), f32),
      grid_spec=pltpu.PrefetchScalarGridSpec(
          num_scalar_prefetch=2,
          grid=(n_t, kmax),
          in_specs=[
              pl.BlockSpec((c_out, tile_k), _msg_map),
              pl.BlockSpec((tile_k, tile_t), _app_map),
              pl.BlockSpec((c_out, tile_t), _col_map),
          ],
          out_specs=pl.BlockSpec((c_out, tile_t), _col_map),
          scratch_shapes=[pltpu.VMEM((c_out, tile_t), f32)],
      ),
      compiler_params=pltpu.CompilerParams(
          dimension_semantics=("parallel", "arbitrary")),
      cost_estimate=pl.CostEstimate(
          flops=int(2 * c_out * tile_k * tile_t * n_t * kmax),
          transcendentals=0,
          bytes_accessed=int((tile_k * tile_t * 2 + c_out * tile_k * 2)
                             * n_t * kmax + c_out * npad * 12)),
  )(kcnt, kidx, msgT, AppT, rootT)

  return outT[:, :n_points].T    # [n_points, c_out] f32


def conv_block1_forward(xCellCenters, xFace, adj, weights,
                        *, tile_t=512, tile_k=512, tile_p=512):
  """Mirrors _ConvBlock1.forward.  The block-CSR skip table is built host-side
  once per mesh (adjacency is static); everything else runs jitted."""
  A_pp = adj["pointPoint"]
  npad = _round_up(A_pp.shape[0], _lcm(_lcm(tile_t, tile_k), tile_p))
  kcnt, kidx = _build_pp_block_tables(A_pp, npad, tile_t, tile_k)
  return _forward_impl(xCellCenters, xFace, adj["centerFace"],
                       adj["facePoint"], A_pp, kcnt, kidx, weights,
                       tile_t=tile_t, tile_k=tile_k, tile_p=tile_p)


# ----------------------------------------------------------------------------
# Plain-JAX glue
# ----------------------------------------------------------------------------
def dense_adjacency(edge_index, edge_attr, n_src, n_tgt):
  """Build A[t, s] = sum of edge weights for edges s -> t."""
  src, tgt = edge_index[0], edge_index[1]
  A = jnp.zeros((n_tgt, n_src), jnp.float32)
  return A.at[tgt, src].add(edge_attr.astype(jnp.float32))


# ----------------------------------------------------------------------------
# Deterministic setup + run
# ----------------------------------------------------------------------------
if __name__ == "__main__":
  key = jax.random.PRNGKey(0)

  in_channels_centers = 4
  in_channels_faces = 3
  out_channels_centerFace = 8
  out_channels = 16

  n_centers, n_faces, n_points = 96, 160, 600   # n_points ragged wrt tiles
  e_cf, e_fp, e_pp = 384, 512, 2048

  keys = jax.random.split(key, 20)

  xCellCenters = jax.random.normal(keys[0], (n_centers, in_channels_centers),
                                   jnp.float32)
  xFace = jax.random.normal(keys[1], (n_faces, in_channels_faces), jnp.float32)

  # Graphs: edge_index (2, E) [src; tgt] and scalar edge_attr (E,).
  ei_cf = jnp.stack([jax.random.randint(keys[2], (e_cf,), 0, n_centers),
                     jax.random.randint(keys[3], (e_cf,), 0, n_faces)])
  ea_cf = jax.random.uniform(keys[4], (e_cf,), jnp.float32)
  ei_fp = jnp.stack([jax.random.randint(keys[5], (e_fp,), 0, n_faces),
                     jax.random.randint(keys[6], (e_fp,), 0, n_points)])
  ea_fp = jax.random.uniform(keys[7], (e_fp,), jnp.float32)
  # Banded (local) point-point connectivity -> empty adjacency blocks, which
  # exercises the block-sparse skip path.
  pp_src = jax.random.randint(keys[8], (e_pp,), 0, n_points)
  pp_off = jax.random.randint(keys[9], (e_pp,), -48, 49)
  pp_tgt = jnp.clip(pp_src + pp_off, 0, n_points - 1)
  ei_pp = jnp.stack([pp_src, pp_tgt])
  ea_pp = jax.random.uniform(keys[10], (e_pp,), jnp.float32)

  adj = {
      "centerFace": dense_adjacency(ei_cf, ea_cf, n_centers, n_faces),
      "facePoint": dense_adjacency(ei_fp, ea_fp, n_faces, n_points),
      "pointPoint": dense_adjacency(ei_pp, ea_pp, n_points, n_points),
  }

  def init_linear(k, c_in, c_out):
    kw, kb = jax.random.split(k)
    scale = 1.0 / jnp.sqrt(jnp.float32(c_in))
    W = jax.random.uniform(kw, (c_in, c_out), jnp.float32, -scale, scale)
    b = jax.random.uniform(kb, (1, c_out), jnp.float32, -scale, scale)
    return W, b

  W_cf, b_cf = init_linear(keys[11], in_channels_centers, out_channels_centerFace)
  W_fp, b_fp = init_linear(keys[12], out_channels_centerFace + in_channels_faces,
                           out_channels)
  W_pp, b_pp = init_linear(keys[13], out_channels, out_channels)
  W_pp_root, _ = init_linear(keys[14], out_channels, out_channels)

  weights = {
      "layerCenterFace": {"W": W_cf, "b": b_cf},
      "layerFacePoint": {"W": W_fp, "b": b_fp},
      "layerPointPoint": {"W": W_pp, "W_root": W_pp_root, "b": b_pp},
  }

  out = conv_block1_forward(xCellCenters, xFace, adj, weights,
                            tile_t=256, tile_k=256, tile_p=256)
  out = jax.block_until_ready(out)
  assert out.shape == (n_points, out_channels)

  # (1) Check against a plain-JAX reference using the SAME bf16 message /
  #     edge-weight casts (f32 accumulation) the kernels use.
  bf = jnp.bfloat16
  def agg(A, msg):
    return jnp.dot(A.astype(bf), msg.astype(bf),
                   preferred_element_type=jnp.float32)

  r_cf = adj["centerFace"] @ (xCellCenters @ W_cf) + b_cf
  m_fp = (r_cf @ W_fp[:out_channels_centerFace]
          + xFace @ W_fp[out_channels_centerFace:])
  r_fp = agg(adj["facePoint"], m_fp) + b_fp
  r_pp = agg(adj["pointPoint"], r_fp @ W_pp) + r_fp @ W_pp_root + b_pp
  assert jnp.allclose(out, r_pp, atol=3e-2, rtol=3e-2), \
      float(jnp.max(jnp.abs(out - r_pp)))

  # (2) Loose sanity check against full-f32 semantics of the original module
  #     (only deviation is the intentional bf16 aggregation casts).
  f_cf = adj["centerFace"] @ (xCellCenters @ W_cf) + b_cf
  f_x = jnp.concatenate([f_cf, xFace], axis=-1)
  f_fp = adj["facePoint"] @ (f_x @ W_fp) + b_fp
  f_pp = adj["pointPoint"] @ (f_fp @ W_pp) + f_fp @ W_pp_root + b_pp
  assert jnp.allclose(out, f_pp, atol=1e-1, rtol=5e-2), \
      float(jnp.max(jnp.abs(out - f_pp)))

  print("KERNEL_OK")
</pallas_src>

<mosaic_0001>
module attributes {stable_mosaic.version = 11 : i64} {
  func.func @_face_point_kernel(%arg0: i32, %arg1: memref<16x160xbf16, #tpu.memory_space<vmem>>, %arg2: memref<160x256xbf16, #tpu.memory_space<vmem>>, %arg3: memref<32x16xf32, #tpu.memory_space<vmem>>, %arg4: memref<16x1xf32, #tpu.memory_space<vmem>>, %arg5: memref<16x1xf32, #tpu.memory_space<vmem>>, %arg6: memref<16x256xbf16, #tpu.memory_space<vmem>>, %arg7: memref<16x256xf32, #tpu.memory_space<vmem>>) attributes {dimension_semantics = [#tpu.dimension_semantics<parallel>], iteration_bounds = array<i64: 3>, scalar_prefetch = 0 : i64, scratch_operands = 0 : i64, tpu.core_type = #tpu.core_type<tc>, window_params = [{pipeline_mode = #tpu.pipeline_mode<synchronous>, transform_indices = @transform_0, window_bounds = array<i64: 16, 160>}, {transform_indices = @transform_1, window_bounds = array<i64: 160, 256>}, {pipeline_mode = #tpu.pipeline_mode<synchronous>, transform_indices = @transform_2, window_bounds = array<i64: 32, 16>}, {pipeline_mode = #tpu.pipeline_mode<synchronous>, transform_indices = @transform_3, window_bounds = array<i64: 16, 1>}, {pipeline_mode = #tpu.pipeline_mode<synchronous>, transform_indices = @transform_4, window_bounds = array<i64: 16, 1>}, {transform_indices = @transform_5, window_bounds = array<i64: 16, 256>}, {transform_indices = @transform_6, window_bounds = array<i64: 16, 256>}]} {
    %c0 = arith.constant 0 : index
    %c0_0 = arith.constant 0 : index
    %0 = vector.load %arg1[%c0, %c0_0] : memref<16x160xbf16, #tpu.memory_space<vmem>>, vector<16x160xbf16>
    %c0_1 = arith.constant 0 : index
    %c0_2 = arith.constant 0 : index
    %1 = vector.load %arg2[%c0_1, %c0_2] : memref<160x256xbf16, #tpu.memory_space<vmem>>, vector<160x256xbf16>
    %cst = arith.constant dense<0.000000e+00> : vector<16x256xf32>
    %2 = tpu.matmul %0, %1, %cst {dimension_numbers = #tpu.dot_dimension_numbers<[1], [0], [0], [1], [0, 0, 1, 1], [], []>} : vector<16x160xbf16>, vector<160x256xbf16>, vector<16x256xf32> -> vector<16x256xf32>
    %c0_3 = arith.constant 0 : index
    %c0_4 = arith.constant 0 : index
    %3 = vector.load %arg4[%c0_3, %c0_4] : memref<16x1xf32, #tpu.memory_space<vmem>>, vector<16x1xf32>
    %4 = vector.broadcast %3 : vector<16x1xf32> to vector<16x256xf32>
    %5 = arith.addf %2, %4 : vector<16x256xf32>
    %c0_5 = arith.constant 0 : index
    %c0_6 = arith.constant 0 : index
    %6 = vector.load %arg3[%c0_5, %c0_6] : memref<32x16xf32, #tpu.memory_space<vmem>>, vector<32x16xf32>
    %cst_7 = arith.constant dense<0.000000e+00> : vector<32x256xf32>
    %7 = tpu.matmul %6, %5, %cst_7 {dimension_numbers = #tpu.dot_dimension_numbers<[1], [0], [0], [1], [0, 0, 1, 1], [], []>} : vector<32x16xf32>, vector<16x256xf32>, vector<32x256xf32> -> vector<32x256xf32>
    %8 = vector.extract_strided_slice %7 {offsets = [0, 0], sizes = [16, 256], strides = [1, 1]} : vector<32x256xf32> to vector<16x256xf32>
    %9 = arith.truncf %8 : vector<16x256xf32> to vector<16x256xbf16>
    %c0_8 = arith.constant 0 : index
    %c0_9 = arith.constant 0 : index
    %10 = vector.load %arg6[%c0_8, %c0_9] : memref<16x256xbf16, #tpu.memory_space<vmem>>, vector<16x256xbf16>
    tpu.vector_store %arg6[%c0_8, %c0_9], %9 {strides = array<i32>} : memref<16x256xbf16, #tpu.memory_space<vmem>>, vector<16x256xbf16>,
    %11 = vector.extract_strided_slice %7 {offsets = [16, 0], sizes = [16, 256], strides = [1, 1]} : vector<32x256xf32> to vector<16x256xf32>
    %c0_10 = arith.constant 0 : index
    %c0_11 = arith.constant 0 : index
    %12 = vector.load %arg5[%c0_10, %c0_11] : memref<16x1xf32, #tpu.memory_space<vmem>>, vector<16x1xf32>
    %13 = vector.broadcast %12 : vector<16x1xf32> to vector<16x256xf32>
    %14 = arith.addf %11, %13 : vector<16x256xf32>
    %c0_12 = arith.constant 0 : index
    %c0_13 = arith.constant 0 : index
    %15 = vector.load %arg7[%c0_12, %c0_13] : memref<16x256xf32, #tpu.memory_space<vmem>>, vector<16x256xf32>
    tpu.vector_store %arg7[%c0_12, %c0_13], %14 {strides = array<i32>} : memref<16x256xf32, #tpu.memory_space<vmem>>, vector<16x256xf32>,
    return
  }
  func.func @transform_0(%arg0: i32) -> (i32, i32) {
    %c0_i32 = arith.constant 0 : i32
    %c0_i32_0 = arith.constant 0 : i32
    %c0_i32_1 = arith.constant 0 : i32
    return %c0_i32, %c0_i32_0 : i32, i32
  }
  func.func @transform_1(%arg0: i32) -> (i32, i32) {
    %c0_i32 = arith.constant 0 : i32
    %c0_i32_0 = arith.constant 0 : i32
    return %c0_i32, %arg0 : i32, i32
  }
  func.func @transform_2(%arg0: i32) -> (i32, i32) {
    %c0_i32 = arith.constant 0 : i32
    %c0_i32_0 = arith.constant 0 : i32
    %c0_i32_1 = arith.constant 0 : i32
    return %c0_i32, %c0_i32_0 : i32, i32
  }
  func.func @transform_3(%arg0: i32) -> (i32, i32) {
    %c0_i32 = arith.constant 0 : i32
    %c0_i32_0 = arith.constant 0 : i32
    %c0_i32_1 = arith.constant 0 : i32
    return %c0_i32, %c0_i32_0 : i32, i32
  }
  func.func @transform_4(%arg0: i32) -> (i32, i32) {
    %c0_i32 = arith.constant 0 : i32
    %c0_i32_0 = arith.constant 0 : i32
    %c0_i32_1 = arith.constant 0 : i32
    return %c0_i32, %c0_i32_0 : i32, i32
  }
  func.func @transform_5(%arg0: i32) -> (i32, i32) {
    %c0_i32 = arith.constant 0 : i32
    %c0_i32_0 = arith.constant 0 : i32
    return %c0_i32, %arg0 : i32, i32
  }
  func.func @transform_6(%arg0: i32) -> (i32, i32) {
    %c0_i32 = arith.constant 0 : i32
    %c0_i32_0 = arith.constant 0 : i32
    return %c0_i32, %arg0 : i32, i32
  }
}

module attributes {stable_mosaic.version = 11 : i64} {
  func.func @_point_point_kernel(%arg0: i32, %arg1: i32, %arg2: memref<3xi32, #tpu.memory_space<smem>>, %arg3: memref<9xi32, #tpu.memory_space<smem>>, %arg4: memref<16x256xbf16, #tpu.memory_space<vmem>>, %arg5: memref<256x256xbf16, #tpu.memory_space<vmem>>, %arg6: memref<16x256xf32, #tpu.memory_space<vmem>>, %arg7: memref<16x256xf32, #tpu.memory_space<vmem>>, %arg8: memref<16x256xf32, #tpu.memory_space<vmem>>) attributes {dimension_semantics = [#tpu.dimension_semantics<parallel>, #tpu.dimension_semantics<arbitrary>], iteration_bounds = array<i64: 3, 3>, scalar_prefetch = 2 : i64, scratch_operands = 1 : i64, tpu.core_type = #tpu.core_type<tc>, window_params = [{transform_indices = @transform_0, window_bounds = array<i64: 16, 256>}, {transform_indices = @transform_1, window_bounds = array<i64: 256, 256>}, {transform_indices = @transform_2, window_bounds = array<i64: 16, 256>}, {transform_indices = @transform_3, window_bounds = array<i64: 16, 256>}]} {
    %c0_i32 = arith.constant 0 : i32
    %0 = arith.cmpi eq, %arg1, %c0_i32 : i32
    %1 = arith.extui %0 : i1 to i32
    %c0_i32_0 = arith.constant 0 : i32
    %2 = arith.cmpi ne, %1, %c0_i32_0 : i32
    scf.if %2 {
      %cst = arith.constant 0.000000e+00 : f32
      %11 = vector.broadcast %cst : f32 to vector<16x256xf32>
      %c0 = arith.constant 0 : index
      %c0_3 = arith.constant 0 : index
      %12 = vector.load %arg8[%c0, %c0_3] : memref<16x256xf32, #tpu.memory_space<vmem>>, vector<16x256xf32>
      tpu.vector_store %arg8[%c0, %c0_3], %11 {strides = array<i32>} : memref<16x256xf32, #tpu.memory_space<vmem>>, vector<16x256xf32>,
    } else {
    }
    %3 = arith.index_cast %arg0 : i32 to index
    %4 = memref.load %arg2[%3] : memref<3xi32, #tpu.memory_space<smem>>
    %5 = arith.cmpi slt, %arg1, %4 : i32
    %6 = arith.extui %5 : i1 to i32
    %c0_i32_1 = arith.constant 0 : i32
    %7 = arith.cmpi ne, %6, %c0_i32_1 : i32
    scf.if %7 {
      %c0 = arith.constant 0 : index
      %c0_3 = arith.constant 0 : index
      %11 = vector.load %arg8[%c0, %c0_3] : memref<16x256xf32, #tpu.memory_space<vmem>>, vector<16x256xf32>
      %c0_4 = arith.constant 0 : index
      %c0_5 = arith.constant 0 : index
      %12 = vector.load %arg4[%c0_4, %c0_5] : memref<16x256xbf16, #tpu.memory_space<vmem>>, vector<16x256xbf16>
      %c0_6 = arith.constant 0 : index
      %c0_7 = arith.constant 0 : index
      %13 = vector.load %arg5[%c0_6, %c0_7] : memref<256x256xbf16, #tpu.memory_space<vmem>>, vector<256x256xbf16>
      %cst = arith.constant dense<0.000000e+00> : vector<16x256xf32>
      %14 = tpu.matmul %12, %13, %cst {dimension_numbers = #tpu.dot_dimension_numbers<[1], [0], [0], [1], [0, 0, 1, 1], [], []>} : vector<16x256xbf16>, vector<256x256xbf16>, vector<16x256xf32> -> vector<16x256xf32>
      %15 = arith.addf %11, %14 : vector<16x256xf32>
      %c0_8 = arith.constant 0 : index
      %c0_9 = arith.constant 0 : index
      %16 = vector.load %arg8[%c0_8, %c0_9] : memref<16x256xf32, #tpu.memory_space<vmem>>, vector<16x256xf32>
      tpu.vector_store %arg8[%c0_8, %c0_9], %15 {strides = array<i32>} : memref<16x256xf32, #tpu.memory_space<vmem>>, vector<16x256xf32>,
    } else {
    }
    %c2_i32 = arith.constant 2 : i32
    %8 = arith.cmpi eq, %arg1, %c2_i32 : i32
    %9 = arith.extui %8 : i1 to i32
    %c0_i32_2 = arith.constant 0 : i32
    %10 = arith.cmpi ne, %9, %c0_i32_2 : i32
    scf.if %10 {
      %c0 = arith.constant 0 : index
      %c0_3 = arith.constant 0 : index
      %11 = vector.load %arg8[%c0, %c0_3] : memref<16x256xf32, #tpu.memory_space<vmem>>, vector<16x256xf32>
      %c0_4 = arith.constant 0 : index
      %c0_5 = arith.constant 0 : index
      %12 = vector.load %arg6[%c0_4, %c0_5] : memref<16x256xf32, #tpu.memory_space<vmem>>, vector<16x256xf32>
      %13 = arith.addf %11, %12 : vector<16x256xf32>
      %c0_6 = arith.constant 0 : index
      %c0_7 = arith.constant 0 : index
      %14 = vector.load %arg7[%c0_6, %c0_7] : memref<16x256xf32, #tpu.memory_space<vmem>>, vector<16x256xf32>
      tpu.vector_store %arg7[%c0_6, %c0_7], %13 {strides = array<i32>} : memref<16x256xf32, #tpu.memory_space<vmem>>, vector<16x256xf32>,
    } else {
    }
    return
  }
  func.func @transform_0(%arg0: i32, %arg1: i32, %arg2: memref<3xi32, #tpu.memory_space<smem>>, %arg3: memref<9xi32, #tpu.memory_space<smem>>) -> (i32, i32) {
    %c3_i32 = arith.constant 3 : i32
    %0 = arith.muli %arg0, %c3_i32 : i32
    %1 = arith.addi %0, %arg1 : i32
    %2 = arith.index_cast %1 : i32 to index
    %3 = memref.load %arg3[%2] : memref<9xi32, #tpu.memory_space<smem>>
    %c0_i32 = arith.constant 0 : i32
    %c0_i32_0 = arith.constant 0 : i32
    return %c0_i32, %3 : i32, i32
  }
  func.func @transform_1(%arg0: i32, %arg1: i32, %arg2: memref<3xi32, #tpu.memory_space<smem>>, %arg3: memref<9xi32, #tpu.memory_space<smem>>) -> (i32, i32) {
    %c3_i32 = arith.constant 3 : i32
    %0 = arith.muli %arg0, %c3_i32 : i32
    %1 = arith.addi %0, %arg1 : i32
    %2 = arith.index_cast %1 : i32 to index
    %3 = memref.load %arg3[%2] : memref<9xi32, #tpu.memory_space<smem>>
    %c0_i32 = arith.constant 0 : i32
    return %3, %arg0 : i32, i32
  }
  func.func @transform_2(%arg0: i32, %arg1: i32, %arg2: memref<3xi32, #tpu.memory_space<smem>>, %arg3: memref<9xi32, #tpu.memory_space<smem>>) -> (i32, i32) {
    %c0_i32 = arith.constant 0 : i32
    %c0_i32_0 = arith.constant 0 : i32
    return %c0_i32, %arg0 : i32, i32
  }
  func.func @transform_3(%arg0: i32, %arg1: i32, %arg2: memref<3xi32, #tpu.memory_space<smem>>, %arg3: memref<9xi32, #tpu.memory_space<smem>>) -> (i32, i32) {
    %c0_i32 = arith.constant 0 : i32
    %c0_i32_0 = arith.constant 0 : i32
    return %c0_i32, %arg0 : i32, i32
  }
}

</mosaic_0001>

<bundles_post_ra>
// kernel: _forward_impl.2
= control target key start
LH: loop header
LB: loop body
LE: loop exit
PB: predicated region body
PF: predicated region fallthrough
CT: control target
= control target key end

     0   :  { %s1040_s21 = smov 0   ;;  %s1042_s22 = smov 0   ;;  %s1207_s0 = inlined_call_operand.vmem [shape: bf16[16,160], index: 0, kind: input, shape index: {}]   ;;  %s1208_s1 = inlined_call_operand.vmem [shape: bf16[160,768], index: 1, kind: input, shape index: {}]   ;;  %s1209_s2 = inlined_call_operand.vmem [shape: f32[32,16], index: 2, kind: input, shape index: {}]   ;;  %s1210_s3 = inlined_call_operand.vmem [shape: f32[16,1], index: 3, kind: input, shape index: {}]   ;;  %s1211_s4 = inlined_call_operand.vmem [shape: f32[16,1], index: 4, kind: input, shape index: {}]   ;;  %s1212_s5 = inlined_call_operand.vmem [shape: bf16[16,768], index: 5, kind: output, shape index: {0}]   ;;  %s1213_s6 = inlined_call_operand.vmem [shape: f32[16,768], index: 6, kind: output, shape index: {1}]  }
   0x1   :  { %s1044_s23 = smov 0  }
   0x2 LB: > { %s1056_s24 = sadd.s32 4294967295, %s1001_s23   ;;  %s1059_s25 = sadd.s32 1, %s1001_s23   ;;  %s1001_s23 = sphi %s1044_s23, %s1217_s23   ;;  %s997_s22 = sphi %s1042_s22, %s1216_s22   ;;  %s993_s21 = sphi %s1040_s21, %s1215_s21  }
   0x3   : > { %s42_s26 = ssub.s32 %s1001_s23, %s1059_s25  ;;  %s45_s27 = sadd.s32 1, %s997_s22 }
   0x4   : > { %p43_p0 = scmp.eq.s32.totalorder %s42_s26, 0  ;;  %p52_p1 = scmp.ne.s32.totalorder %s997_s22, %s993_s21 }
   0x5   : > { %p53_p2 = scmp.eq.s32.totalorder %s1001_s23, 0  ;;  %p145_p3 = scmp.eq.s32.totalorder %s1056_s24, 2 }
   0x6   : > { %s1069_s28 = scalar_select %p43_p0, %s997_s22, %s45_s27  }
   0x7   : > { %p54_p4 = por %p53_p2, %p52_p1  ;;  %p1071_p5 = por %p145_p3, %p52_p1 }
   0x8   : > { %p864_p6 = scmp.ge.s32.totalorder %s1001_s23, 3 }
   0xa   : > { %205 = sbr.rel (%p864_p6) target bundleno = 32 (0x20), region = 32 }
  0x11   : > { %208 = sbr.rel (!%p54_p4) target bundleno = 32 (0x20), region = 36  ;;  %s210_s30 = sand.u32 (%p54_p4), 1, %s997_s22  }
  0x12   : > { %s907_s7 = sshll.u32 (%p54_p4), %s1001_s23, 3  ;;  %s916_s8 = smul.u32 (%p54_p4), 160, %s210_s30 }
  0x13   : > { %s1081_s11 = scalar_lea.vmem (%p54_p4), %s1208_s1, %s907_s7 }
  0x14   : > { %v281_v0 = vld [vmem:[%s1081_s11] sm:$0xff] (%p54_p4)  ;;  %v283_v1 = vld [vmem:[%s1081_s11 + $0x18] sm:$0xff] (%p54_p4)  ;;  %v285_v2 = vld [vmem:[%s1081_s11 + $0x30] sm:$0xff] (%p54_p4)  ;;  %s1089_s12 = scalar_lea.vmem (%p54_p4), [#allocation2], %s916_s8 }
  0x15   : > { %v287_v3 = vld [vmem:[%s1081_s11 + $0x48] sm:$0xff] (%p54_p4)  ;;  %v289_v4 = vld [vmem:[%s1081_s11 + $0x60] sm:$0xff] (%p54_p4)  ;;  %v291_v5 = vld [vmem:[%s1081_s11 + $0x78] sm:$0xff] (%p54_p4)  ;;  %282 = vst [vmem:[%s1089_s12] sm:$0xff] (%p54_p4), %v281_v0 }
  0x16   : > { %284 = vst [vmem:[%s1089_s12 + $0x8] sm:$0xff] (%p54_p4), %v283_v1  ;;  %286 = vst [vmem:[%s1089_s12 + $0x10] sm:$0xff] (%p54_p4), %v285_v2  ;;  %v293_v6 = vld [vmem:[%s1081_s11 + $0x90] sm:$0xff] (%p54_p4)  ;;  %v295_v7 = vld [vmem:[%s1081_s11 + $0xa8] sm:$0xff] (%p54_p4) }
  0x17   : > { %288 = vst [vmem:[%s1089_s12 + $0x18] sm:$0xff] (%p54_p4), %v287_v3  ;;  %290 = vst [vmem:[%s1089_s12 + $0x20] sm:$0xff] (%p54_p4), %v289_v4  ;;  %v297_v8 = vld [vmem:[%s1081_s11 + $0xc0] sm:$0xff] (%p54_p4)  ;;  %v299_v9 = vld [vmem:[%s1081_s11 + $0xd8] sm:$0xff] (%p54_p4) }
  0x18   : > { %292 = vst [vmem:[%s1089_s12 + $0x28] sm:$0xff] %v291_v5  ;;  %294 = vst [vmem:[%s1089_s12 + $0x30] sm:$0xff] %v293_v6  ;;  %v301_v10 = vld [vmem:[%s1081_s11 + $0xf0] sm:$0xff]  ;;  %v303_v11 = vld [vmem:[%s1081_s11 + $0x108] sm:$0xff] }
  0x19   : > { %296 = vst [vmem:[%s1089_s12 + $0x38] sm:$0xff] %v295_v7  ;;  %298 = vst [vmem:[%s1089_s12 + $0x40] sm:$0xff] %v297_v8  ;;  %v305_v12 = vld [vmem:[%s1081_s11 + $0x120] sm:$0xff]  ;;  %v307_v13 = vld [vmem:[%s1081_s11 + $0x138] sm:$0xff] }
  0x1a   : > { %300 = vst [vmem:[%s1089_s12 + $0x48] sm:$0xff] %v299_v9  ;;  %302 = vst [vmem:[%s1089_s12 + $0x50] sm:$0xff] %v301_v10  ;;  %v309_v14 = vld [vmem:[%s1081_s11 + $0x150] sm:$0xff]  ;;  %v311_v15 = vld [vmem:[%s1081_s11 + $0x168] sm:$0xff] }
  0x1b   : > { %304 = vst [vmem:[%s1089_s12 + $0x58] sm:$0xff] %v303_v11  ;;  %306 = vst [vmem:[%s1089_s12 + $0x60] sm:$0xff] %v305_v12  ;;  %v313_v16 = vld [vmem:[%s1081_s11 + $0x180] sm:$0xff]  ;;  %v315_v17 = vld [vmem:[%s1081_s11 + $0x198] sm:$0xff] }
  0x1c   : > { %308 = vst [vmem:[%s1089_s12 + $0x68] sm:$0xff] %v307_v13  ;;  %310 = vst [vmem:[%s1089_s12 + $0x70] sm:$0xff] %v309_v14  ;;  %v317_v18 = vld [vmem:[%s1081_s11 + $0x1b0] sm:$0xff]  ;;  %v319_v19 = vld [vmem:[%s1081_s11 + $0x1c8] sm:$0xff] }
  0x1d   : > { %312 = vst [vmem:[%s1089_s12 + $0x78] sm:$0xff] %v311_v15  ;;  %314 = vst [vmem:[%s1089_s12 + $0x80] sm:$0xff] %v313_v16 }
  0x1e   : > { %316 = vst [vmem:[%s1089_s12 + $0x88] sm:$0xff] %v315_v17  ;;  %318 = vst [vmem:[%s1089_s12 + $0x90] sm:$0xff] %v317_v18 }
  0x1f   : > { %320 = vst [vmem:[%s1089_s12 + $0x98] sm:$0xff] %v319_v19 }
  0x20 PF: > { %p867_p7 = scmp.ge.s32.totalorder %s1001_s23, 1  ;;  %p325_p8 = scmp.lt.s32.totalorder %s1001_s23, 4 }
  0x22   : > { %p326_p9 = pnand %p867_p7, %p325_p8 }
  0x23   : > { %s1128_s13 = sand.u32 (!%p326_p9), 1, %s993_s21   ;;  %vm511_vm0 = vcmask (!%p326_p9), 261120   ;;  %v978_v20 = vld [vmem:[%s1207_s0 + $0x4] ss:$8 sps:$4 sm:$0xff] (!%p326_p9)   ;;  %v1003_v22 = vmov (!%p326_p9), 0   ;;  %v1004_v45 = vmov (!%p326_p9), 0.0  }
  0x24   : > { %329 = sbr.rel (%p326_p9) target bundleno = 540 (0x21c), region = 74  ;;  %v390_v21 = vld [vmem:[%s1210_s3] sm:$0xff] (!%p326_p9)  ;;  %944 = vset.pattern.permute.xlu0 (!%p326_p9), %v1003_v22  ;;  %945 = vset.pattern.permute.xlu1 (!%p326_p9), %v1003_v22  ;;  %v391_v23 = vld [vmem:[%s1210_s3 + $0x8] sm:$0xff] (!%p326_p9)  ;;  %vm562_vm1 = vcmask (!%p326_p9), 130048   ;;  %v560_v62 = vld [vmem:[%s1209_s2 + $0x10] sm:$0xff] (!%p326_p9)  ;;  %s868_s18 = sshll.u32 (!%p326_p9), %s1128_s13, 4 }
  0x25   : > { %s917_s14 = smul.u32 (!%p326_p9), 160, %s1128_s13  ;;  %892 = vmatprep.mubr.msk.bf16.mxu0 (!%p326_p9), %vm511_vm0, %v978_v20  ;;  %394 = vperm.xlu0 (!%p326_p9), %944, %v390_v21   ;;  %v976_v44 = vld [vmem:[%s1207_s0] ss:$8 sps:$4 sm:$0xff] (!%p326_p9)   ;;  %v561_v63 = vld [vmem:[%s1209_s2 + $0x18] sm:$0xff] (!%p326_p9)  ;;  %s357_s19 = scalar_lea.vmem (!%p326_p9), [#allocation3], %s868_s18 }
  0x26   : > { %639 = vmatprep.mubr.f32.mxu1 (!%p326_p9), %v1004_v45  ;;  %v678_v46 = vld [vmem:[%s1211_s4] sm:$0xff] (!%p326_p9)  ;;  %v679_v47 = vld [vmem:[%s1211_s4 + $0x8] sm:$0xff] (!%p326_p9)  ;;  %s869_s20 = sshll.u32 (!%p326_p9), %s1128_s13, 5 }
  0x27   : > { %s1140_s21 = scalar_lea.vmem (!%p326_p9), [#allocation2], %s917_s14  ;;  %682 = vperm.xlu1 (!%p326_p9), %945, %v678_v46   ;;  %v558_v60 = vld [vmem:[%s1209_s2] sm:$0xff] (!%p326_p9)  ;;  %v559_v61 = vld [vmem:[%s1209_s2 + $0x8] sm:$0xff] (!%p326_p9) }
  0x28   : > { %v946_v24 = vld [vmem:[%s1140_s21 + $0x4] ss:$8 sps:$4 sm:$0xff] (!%p326_p9)   ;;  %v948_v25 = vld [vmem:[%s1140_s21] ss:$8 sps:$4 sm:$0xff] (!%p326_p9)   ;;  %v949_v26 = vld [vmem:[%s1140_s21 + $0x14] ss:$8 sps:$4 sm:$0xff] (!%p326_p9)  }
  0x29   : > { %515 = vmatprep.subr.bf16.mxu0 (!%p326_p9), %v946_v24  ;;  %v951_v27 = vld [vmem:[%s1140_s21 + $0x10] ss:$8 sps:$4 sm:$0xff] (!%p326_p9)   ;;  %399 = vperm.xlu0 (!%p326_p9), %944, %v391_v23   ;;  %v952_v28 = vld [vmem:[%s1140_s21 + $0x24] ss:$8 sps:$4 sm:$0xff] (!%p326_p9)   ;;  %v954_v29 = vld [vmem:[%s1140_s21 + $0x20] ss:$8 sps:$4 sm:$0xff] (!%p326_p9)  }
  0x2a   : > { %516 = vmatpush1.bf16.msra.mxu0 (!%p326_p9), %v948_v25  ;;  %v955_v30 = vld [vmem:[%s1140_s21 + $0x34] ss:$8 sps:$4 sm:$0xff] (!%p326_p9)   ;;  %v957_v31 = vld [vmem:[%s1140_s21 + $0x30] ss:$8 sps:$4 sm:$0xff] (!%p326_p9)   ;;  %v958_v32 = vld [vmem:[%s1140_s21 + $0x44] ss:$8 sps:$4 sm:$0xff] (!%p326_p9)  }
  0x2b   : > { %517 = vmatprep.subr.bf16.mxu0 %v949_v26  ;;  %v960_v33 = vld [vmem:[%s1140_s21 + $0x40] ss:$8 sps:$4 sm:$0xff]   ;;  %v961_v34 = vld [vmem:[%s1140_s21 + $0x54] ss:$8 sps:$4 sm:$0xff]   ;;  %v963_v35 = vld [vmem:[%s1140_s21 + $0x50] ss:$8 sps:$4 sm:$0xff]   ;;  %687 = vperm.xlu1 %945, %v679_v47  }
  0x2c   : > { %v964_v36 = vld [vmem:[%s1140_s21 + $0x64] ss:$8 sps:$4 sm:$0xff]   ;;  %v966_v37 = vld [vmem:[%s1140_s21 + $0x60] ss:$8 sps:$4 sm:$0xff]   ;;  %v967_v38 = vld [vmem:[%s1140_s21 + $0x74] ss:$8 sps:$4 sm:$0xff]  }
  0x2d   : > { %v969_v39 = vld [vmem:[%s1140_s21 + $0x70] ss:$8 sps:$4 sm:$0xff]   ;;  %v970_v40 = vld [vmem:[%s1140_s21 + $0x84] ss:$8 sps:$4 sm:$0xff]   ;;  %v972_v41 = vld [vmem:[%s1140_s21 + $0x80] ss:$8 sps:$4 sm:$0xff]  }
  0x2e   : > { %518 = vmatpush1.bf16.msra.mxu0 %v951_v27  ;;  %v973_v42 = vld [vmem:[%s1140_s21 + $0x94] ss:$8 sps:$4 sm:$0xff]   ;;  %v975_v43 = vld [vmem:[%s1140_s21 + $0x90] ss:$8 sps:$4 sm:$0xff]   ;;  %s363_s21 = scalar_lea.vmem [#allocation4], %s869_s20  ;;  %s910_s13 = sshll.u32 (%p1071_p5), %s1056_s24, 3 }
  0x2f   : > { %519 = vmatprep.subr.bf16.mxu0 %v952_v28  ;;  %s711_s27 = scalar_lea.vmem (%p1071_p5), %s1212_s5, %s910_s13 }
  0x32   : > { %520 = vmatpush1.bf16.msra.mxu0 %v954_v29 }
  0x33   : > { %521 = vmatprep.subr.bf16.mxu0 %v955_v30 }
  0x36   : > { %522 = vmatpush1.bf16.msra.mxu0 %v957_v31 }
  0x37   : > { %523 = vmatprep.subr.bf16.mxu0 %v958_v32 }
  0x3a   : > { %524 = vmatpush1.bf16.msra.mxu0 %v960_v33 }
  0x3b   : > { %525 = vmatprep.subr.bf16.mxu0 %v961_v34 }
  0x3e   : > { %526 = vmatpush1.bf16.msra.mxu0 %v963_v35 }
  0x3f   : > { %527 = vmatprep.subr.bf16.mxu0 %v964_v36 }
  0x42   : > { %528 = vmatpush1.bf16.msra.mxu0 %v966_v37 }
  0x43   : > { %529 = vmatprep.subr.bf16.mxu0 %v967_v38 }
  0x46   : > { %530 = vmatpush1.bf16.msra.mxu0 %v969_v39 }
  0x47   : > { %531 = vmatprep.subr.bf16.mxu0 %v970_v40 }
  0x4a   : > { %532 = vmatpush1.bf16.msra.mxu0 %v972_v41 }
  0x4b   : > { %533 = vmatprep.subr.bf16.mxu0 %v973_v42 }
  0x4e   : > { %534 = vmatpush1.bf16.msra.mxu0 %v975_v43 }
  0x51   : > { %548 = vmatmul.mubr.bf16.vlgmr.msra.gmra.mrb[0].mxu0 %v976_v44 }
  0xa4   : > { %v395_v48 = vpop.permute.xlu0 %394 }
  0xa6   : > { %v683_v5 = vpop.permute.xlu1 %682 }
  0xa8   : > { %v400_v51 = vpop.permute.xlu0 %399 }
  0xaa   : > { %v688_v11 = vpop.permute.xlu1 %687 }
 0x124   : > { %v549_v49 = vpop.f32.mrb[0].mxu0 }
 0x125   : > { %v551_v50 = vpop.f32.mrb[1].mxu0  ;;  %v550_v53 = vadd.f32 %v549_v49, %v395_v48 }
 0x126   : > { %v553_v52 = vpop.f32.mrb[2].mxu0  ;;  %v552_v56 = vadd.f32 %v551_v50, %v395_v48 }
 0x127   : > { %v554_v54 = vadd.f32 %v553_v52, %v400_v51  ;;  %v555_v55 = vpop.f32.mrb[3].mxu0 }
 0x128   : > { %v556_v57 = vadd.f32 %v555_v55, %v400_v51 }
 0x129   : > { %v914_v58 = vpack.c.bf16 %v554_v54, %v550_v53 }
 0x12a   : > { %v912_v59 = vpack.c.bf16 %v556_v57, %v552_v56 }
 0x12c   : > { %913 = vmatprep.subr.bf16.mxu1 %v912_v59 }
 0x12d   : > { %915 = vmatpush1.bf16.msra.mxu1 %v914_v58 }
 0x130   : > { %893 = vmatmul.mubr.msk.f32.vlgmr.msra.gmra.mrb[0].mxu1 %vm562_vm1, %v558_v60 }
 0x131   : > { %645 = vmatprep.mubr.f32.mxu1 %v1004_v45 }
 0x134   : > { %894 = vmatmul.mubr.msk.f32.gmra.mrb[2].mxu1 %vm562_vm1, %v559_v61 }
 0x135   : > { %651 = vmatprep.mubr.f32.mxu1 %v1004_v45 }
 0x138   : > { %895 = vmatmul.mubr.msk.f32.gmra.mrb[4].mxu1 %vm562_vm1, %v560_v62 }
 0x139   : > { %657 = vmatprep.mubr.f32.mxu1 %v1004_v45 }
 0x13c   : > { %896 = vmatmul.mubr.msk.f32.gmra.mrb[6].mxu1 %vm562_vm1, %v561_v63 }
 0x203   : > { %v641_v0 = vpop.f32.mrb[0].mxu1 }
 0x204   : > { %v643_v1 = vpop.f32.mrb[1].mxu1 }
 0x205   : > { %v908_v2 = vpack.c.bf16 %v643_v1, %v641_v0 }
 0x207   : > { %676 = vst [vmem:[%s357_s19] sm:$0xff] %v908_v2  ;;  %v647_v3 = vpop.f32.mrb[2].mxu1 }
 0x208   : > { %v649_v4 = vpop.f32.mrb[3].mxu1 }
 0x209   : > { %v909_v6 = vpack.c.bf16 %v649_v4, %v647_v3 }
 0x20b   : > { %677 = vst [vmem:[%s357_s19 + $0x8] sm:$0xff] %v909_v6  ;;  %v653_v7 = vpop.f32.mrb[4].mxu1 }
 0x20c   : > { %v690_v8 = vadd.f32 %v683_v5, %v653_v7  ;;  %v655_v9 = vpop.f32.mrb[5].mxu1 }
 0x20d   : > { %v691_v10 = vadd.f32 %v683_v5, %v655_v9  ;;  %708 = sbr.rel (!%p1071_p5) target bundleno = 532 (0x214), region = 82 }
 0x20e   : > { %694 = vst [vmem:[%s363_s21] sm:$0xff] %v690_v8  ;;  %v741_v16 = vld [vmem:[%s357_s19] sm:$0xff] (%p1071_p5) }
 0x20f   : > { %695 = vst [vmem:[%s363_s21 + $0x8] sm:$0xff] %v691_v10  ;;  %v659_v12 = vpop.f32.mrb[6].mxu1  ;;  %742 = vst [vmem:[%s711_s27] sm:$0xff] (%p1071_p5), %v741_v16 }
 0x210   : > { %v692_v13 = vadd.f32 %v688_v11, %v659_v12  ;;  %v661_v14 = vpop.f32.mrb[7].mxu1 }
 0x211   : > { %v693_v15 = vadd.f32 %v688_v11, %v661_v14 }
 0x212   : > { %696 = vst [vmem:[%s363_s21 + $0x10] sm:$0xff] %v692_v13  ;;  %v743_v17 = vld [vmem:[%s357_s19 + $0x8] sm:$0xff] (%p1071_p5) }
 0x213   : > { %697 = vst [vmem:[%s363_s21 + $0x18] sm:$0xff] %v693_v15  ;;  %744 = vst [vmem:[%s711_s27 + $0x18] sm:$0xff] (%p1071_p5), %v743_v17 }
 0x214 PF: > { %750 = sbr.rel (!%p1071_p5) target bundleno = 540 (0x21c), region = 120  ;;  %s911_s30 = sshll.u32 (%p1071_p5), %s1056_s24, 4 }
 0x215   : > { %v766_v18 = vld [vmem:[%s363_s21] sm:$0xff] (%p1071_p5)  ;;  %s753_s9 = scalar_lea.vmem (%p1071_p5), %s1213_s6, %s911_s30 }
 0x216   : > { %v768_v19 = vld [vmem:[%s363_s21 + $0x8] sm:$0xff] (%p1071_p5)  ;;  %767 = vst [vmem:[%s753_s9] sm:$0xff] (%p1071_p5), %v766_v18 }
 0x217   : > { %769 = vst [vmem:[%s753_s9 + $0x8] sm:$0xff] (%p1071_p5), %v768_v19 }
 0x219   : > { %v770_v20 = vld [vmem:[%s363_s21 + $0x10] sm:$0xff] (%p1071_p5) }
 0x21a   : > { %v772_v21 = vld [vmem:[%s363_s21 + $0x18] sm:$0xff] (%p1071_p5)  ;;  %771 = vst [vmem:[%s753_s9 + $0x30] sm:$0xff] (%p1071_p5), %v770_v20 }
 0x21b   : > { %773 = vst [vmem:[%s753_s9 + $0x38] sm:$0xff] %v772_v21 }
 0x21c PF: > { %p14_p10 = scmp.ge.s32.totalorder %s1059_s25, 5   ;;  %s1215_s21 = smov %s997_s22 }
 0x21d   : > { %s1216_s22 = smov %s1069_s28  ;;  %s1217_s23 = smov %s1059_s25 }
 0x21e   :  { %16 = sbr.rel (!%p14_p10) target bundleno = 2 (0x2), region = 186 }

// kernel: _forward_impl.3
= control target key start
LH: loop header
LB: loop body
LE: loop exit
PB: predicated region body
PF: predicated region fallthrough
CT: control target
= control target key end

     0   :  { %s1590_s0 = inlined_call_operand.vmem [shape: s32[3], index: 0, kind: input, shape index: {}]   ;;  %s1591_s2 = inlined_call_operand.vmem [shape: bf16[16,768], index: 2, kind: input, shape index: {}]   ;;  %s1592_s3 = inlined_call_operand.vmem [shape: bf16[768,768], index: 3, kind: input, shape index: {}]   ;;  %s1593_s4 = inlined_call_operand.vmem [shape: f32[16,768], index: 4, kind: input, shape index: {}]   ;;  %s1594_s5 = inlined_call_operand.vmem [shape: f32[16,768], index: 5, kind: output, shape index: {}]   ;;  %s1595_s1 = inlined_call_operand.vmem [shape: s32[9], index: 1, kind: input, shape index: {}]  }
   0x1   :  { %1600 = sst [smem:[#allocation17_spill]] %s1594_s5  ;;  %s10_s20 = sshll.u32 %s1590_s0, 4  ;;  %s11_s20 = int_to_ptr.vmem [resolvable:$true] %s10_s20 }
   0x2   :  { %s14_s23 = sshll.u32 %s1595_s1, 4  ;;  %s1127_s24 = scalar_lea.vmem %s11_s20, 16  ;;  %s15_s23 = int_to_ptr.vmem [resolvable:$true] %s14_s23 }
   0x3   :  { %p1128_p0 = scmp.ne.s32.totalorder %s11_s20, %s1127_s24  ;;  %p1132_p1 = scmp.lt.s32.totalorder %s11_s20, %s11_s20 }
   0x4   :  { %p1133_p2 = scmp.lt.s32.totalorder %s1127_s24, %s1127_s24 }
   0x6   :  { %p1134_p3 = por %p1133_p2, %p1132_p1 }
   0x8   :  { %p1135_p4 = pnand %p1134_p3, %p1128_p0 }
   0xa   :  { %1138 = shalt.err (!%p1135_p4)  }
   0xb   :  { %s1241_s25 = smov [#allocation4]   ;;  %s1139_s26 = scalar_lea.vmem %s15_s23, 16 }
   0xc   :  { %13 = dma.vmem_to_smem %s11_s20, 16, %s1241_s25, [#allocation3] }
   0xd   :  { %p1140_p5 = scmp.ne.s32.totalorder %s15_s23, %s1139_s26  ;;  %p1144_p6 = scmp.lt.s32.totalorder %s15_s23, %s15_s23 }
   0xe   :  { %p1145_p7 = scmp.lt.s32.totalorder %s1139_s26, %s1139_s26 }
  0x10   :  { %p1146_p8 = por %p1145_p7, %p1144_p6 }
  0x12   :  { %p1147_p9 = pnand %p1146_p8, %p1140_p5 }
  0x14   :  { %1150 = shalt.err (!%p1147_p9)  }
  0x15   :  { %s1242_s0 = smov [#allocation5]  }
  0x16   :  { %17 = dma.vmem_to_smem %s15_s23, 16, %s1242_s0, [#allocation3] }
  0x17   :  { %1195 = dma.done.wait [#allocation3], 32 }
  0x18   :  { %1196 = vsyncadd [#allocation3], 4294967264 }
  0x19   :  { %19 = sfence }
  0x1a   :  { %s1280_s1 = smov 0   ;;  %s1282_s27 = smov 0  }
  0x1b   :  { %s1284_s28 = smov 0   ;;  %s1286_s29 = smov 0  }
  0x1c   :  { %s1288_s30 = smov 0   ;;  %s1290_s6 = smov 0  }
  0x1d   :  { %s1292_s7 = smov 0   ;;  %s1294_s8 = smov 0  }
  0x1e   :  { %s1296_s9 = smov 0   ;;  %s1298_s10 = smov 0  }
  0x1f   :  { %s1300_s11 = smov 0  }
  0x20 LB: > { %1601 = sst [smem:[#allocation11_spill]] %s1227_s8  ;;  %s34_s12 = sadd.s32 1, %s1231_s9  ;;  %s1239_s11 = sphi %s1300_s11, %s25_s11   ;;  %s1235_s10 = sphi %s1298_s10, %s1626_s10   ;;  %s1231_s9 = sphi %s1296_s9, %s1617_s9   ;;  %s1227_s8 = sphi %s1294_s8, %s1625_s8   ;;  %s1223_s7 = sphi %s1292_s7, %s1616_s7   ;;  %s1219_s6 = sphi %s1290_s6, %s1624_s6   ;;  %s1215_s30 = sphi %s1288_s30, %s1623_s30   ;;  %s1211_s29 = sphi %s1286_s29, %s1622_s29   ;;  %s1207_s28 = sphi %s1284_s28, %s1621_s28   ;;  %s1203_s27 = sphi %s1282_s27, %s1620_s27   ;;  %s1199_s1 = sphi %s1280_s1, %s1619_s1  }
  0x21   : > { %1602 = sst [smem:[#allocation12_spill]] %s1231_s9  ;;  %p35_p10 = scmp.ge.s32.totalorder %s34_s12, 3 }
  0x22   : > { %s37_s13 = sadd.s32 1, %s1235_s10  ;;  %s41_s14 = smul.u32 3, %s1235_s10 }
  0x23   : > { %s1628_s12 = smov (%p35_p10, %s34_s12), 0  ;;  %s1630_s13 = smov (!%p35_p10, %s37_s13), %s1235_s10 }
  0x24   : > { %1603 = sst [smem:[#allocation13_spill]] %s1628_s12  ;;  %s1342_s15 = sadd.s32 %s1231_s9, %s41_s14 }
  0x25   : > { %p57_p11 = scmp.ne.s32.totalorder %s1219_s6, %s1215_s30  ;;  %s919_s16 = sadd.s32 4294967295, %s1239_s11  }
  0x26   : > { %p39_p12 = scmp.ge.s32.totalorder %s1630_s13, 3  ;;  %s43_s17 = sld [smem:[#allocation5 + %s1342_s15]] }
  0x27   : > { %p58_p13 = scmp.eq.s32.totalorder %s1239_s11, 0  ;;  %s75_s19 = sld [smem:[#allocation5 + %s1342_s15]] }
  0x28   : > { %s1632_s13 = smov (%p39_p12, %s1630_s13), 0  ;;  %p91_p1 = scmp.ne.s32.totalorder %s1211_s29, %s1207_s28 }
  0x29   : > { %1604 = sst [smem:[#allocation14_spill]] %s1632_s13  ;;  %p1353_p0 = por %p58_p13, %p57_p11 }
  0x2a   : > { %s44_s20 = smul.u32 3, %s1632_s13  ;;  %s80_s21 = ssub.s32 %s1235_s10, %s1632_s13 }
  0x2b   : > { %p108_p2 = scmp.eq.s32.totalorder %s80_s21, 0  ;;  %s110_s23 = sadd.s32 1, %s1203_s27 }
  0x2c   : > { %s45_s22 = sadd.s32 %s44_s20, %s1628_s12  ;;  %p1367_p3 = por %p91_p1, %p58_p13 }
  0x2d   : > { %s46_s24 = sld [smem:[#allocation5 + %s45_s22]]  ;;  %p117_p4 = scmp.ne.s32.totalorder %s1203_s27, %s1199_s1 }
  0x2e   : > { %s78_s25 = sld [smem:[#allocation5 + %s45_s22]]  ;;  %p147_p6 = scmp.eq.s32.totalorder %s919_s16, 8 }
  0x2f   : > { %s1374_s0 = scalar_select %p108_p2, %s1203_s27, %s110_s23  }
  0x30   : > { %p1378_p5 = por %p117_p4, %p58_p13  ;;  %s50_s20 = sadd.s32 1, %s1219_s6 }
  0x31   : > { %1607 = sst [smem:[#allocation15_spill]] %s1374_s0  ;;  %s84_s13 = sadd.s32 1, %s1211_s29 }
  0x32   : > { %p1384_p7 = por %p147_p6, %p117_p4  ;;  %p922_p10 = scmp.ge.s32.totalorder %s1239_s11, 9 }
  0x33   : > { %s47_s22 = ssub.s32 %s43_s17, %s46_s24 }
  0x34   : > { %s1609_s12 = scalar_select %p1384_p7, 1, 0 }
  0x35   : > { %s79_s9 = ssub.s32 %s75_s19, %s78_s25  ;;  %p48_p8 = scmp.eq.s32.totalorder %s47_s22, 0 }
  0x36   : > { %1610 = sst [smem:[#allocation16_spill]] %s1609_s12  ;;  %s81_s5 = sor.u32 %s80_s21, %s79_s9 }
  0x37   : > { %p82_p9 = scmp.eq.s32.totalorder %s81_s5, 0  ;;  %169 = sbr.rel (%p922_p10) target bundleno = 108 (0x6c), region = 16 }
  0x38   : > { %s1389_s8 = scalar_select %p48_p8, %s1219_s6, %s50_s20  }
  0x39   : > { %s1392_s23 = scalar_select %p82_p9, %s1211_s29, %s84_s13  }
  0x3e   : > { %172 = sbr.rel (!%p1353_p0) target bundleno = 73 (0x49), region = 20  ;;  %s174_s16 = sand.u32 (%p1353_p0), 1, %s1219_s6  }
  0x3f   : > { %s179_s0 = sld [smem:[#allocation5 + %s1342_s15]] (%p1353_p0)  ;;  %s923_s12 = sshll.u32 (%p1353_p0), %s174_s16, 4 }
  0x40   : > { %s176_s9 = scalar_lea.vmem (%p1353_p0), [#allocation6], %s923_s12 }
  0x45   : > { %s981_s17 = sshll.u32 %s179_s0, 3 }
  0x46   : > { %s182_s5 = scalar_lea.vmem %s1591_s2, %s981_s17 }
  0x47   : > { %v212_v0 = vld [vmem:[%s182_s5] sm:$0xff]  ;;  %v214_v1 = vld [vmem:[%s182_s5 + $0x18] sm:$0xff] }
  0x48   : > { %213 = vst [vmem:[%s176_s9] sm:$0xff] %v212_v0  ;;  %215 = vst [vmem:[%s176_s9 + $0x8] sm:$0xff] %v214_v1 }
  0x49 PF: > { %221 = sbr.rel (!%p1367_p3) target bundleno = 101 (0x65), region = 58  ;;  %s228_s13 = sld [smem:[#allocation5 + %s1342_s15]] (%p1367_p3) }
  0x4a   : > { %s223_s18 = sand.u32 (%p1367_p3), 1, %s1211_s29   ;;  %s928_s21 = sshll.u32 (%p1367_p3), %s1235_s10, 1 }
  0x4b   : > { %s926_s25 = sshll.u32 (%p1367_p3), %s223_s18, 8 }
  0x4c   : > { %s1415_s15 = scalar_lea.vmem (%p1367_p3), [#allocation7], %s926_s25 }
  0x4f   : > { %s984_s0 = smul.u32 (%p1367_p3), 192, %s228_s13 }
  0x51   : > { %s232_s20 = sadd.s32 %s984_s0, %s928_s21 }
  0x52   : > { %s930_s22 = sshll.u32 %s232_s20, 2 }
  0x53   : > { %s1410_s12 = scalar_lea.vmem %s1592_s3, %s930_s22 }
  0x54   : > { %v324_v2 = vld [vmem:[%s1410_s12] sm:$0xff]  ;;  %v326_v3 = vld [vmem:[%s1410_s12 + $0x18] sm:$0xff]  ;;  %v328_v4 = vld [vmem:[%s1410_s12 + $0x30] sm:$0xff] }
  0x55   : > { %325 = vst [vmem:[%s1415_s15] sm:$0xff] %v324_v2  ;;  %327 = vst [vmem:[%s1415_s15 + $0x8] sm:$0xff] %v326_v3  ;;  %v330_v5 = vld [vmem:[%s1410_s12 + $0x48] sm:$0xff]  ;;  %v332_v6 = vld [vmem:[%s1410_s12 + $0x60] sm:$0xff] }
  0x56   : > { %329 = vst [vmem:[%s1415_s15 + $0x10] sm:$0xff] %v328_v4  ;;  %v334_v7 = vld [vmem:[%s1410_s12 + $0x78] sm:$0xff]  ;;  %331 = vst [vmem:[%s1415_s15 + $0x18] sm:$0xff] %v330_v5  ;;  %v336_v8 = vld [vmem:[%s1410_s12 + $0x90] sm:$0xff] }
  0x57   : > { %333 = vst [vmem:[%s1415_s15 + $0x20] sm:$0xff] %v332_v6  ;;  %335 = vst [vmem:[%s1415_s15 + $0x28] sm:$0xff] %v334_v7  ;;  %v338_v9 = vld [vmem:[%s1410_s12 + $0xa8] sm:$0xff]  ;;  %v340_v10 = vld [vmem:[%s1410_s12 + $0xc0] sm:$0xff] }
  0x58   : > { %337 = vst [vmem:[%s1415_s15 + $0x30] sm:$0xff] %v336_v8  ;;  %339 = vst [vmem:[%s1415_s15 + $0x38] sm:$0xff] %v338_v9  ;;  %v342_v11 = vld [vmem:[%s1410_s12 + $0xd8] sm:$0xff]  ;;  %v344_v12 = vld [vmem:[%s1410_s12 + $0xf0] sm:$0xff] }
  0x59   : > { %341 = vst [vmem:[%s1415_s15 + $0x40] sm:$0xff] %v340_v10  ;;  %v346_v13 = vld [vmem:[%s1410_s12 + $0x108] sm:$0xff]  ;;  %343 = vst [vmem:[%s1415_s15 + $0x48] sm:$0xff] %v342_v11  ;;  %v348_v14 = vld [vmem:[%s1410_s12 + $0x120] sm:$0xff] }
  0x5a   : > { %345 = vst [vmem:[%s1415_s15 + $0x50] sm:$0xff] %v344_v12  ;;  %347 = vst [vmem:[%s1415_s15 + $0x58] sm:$0xff] %v346_v13  ;;  %v350_v15 = vld [vmem:[%s1410_s12 + $0x138] sm:$0xff]  ;;  %v352_v16 = vld [vmem:[%s1410_s12 + $0x150] sm:$0xff] }
  0x5b   : > { %349 = vst [vmem:[%s1415_s15 + $0x60] sm:$0xff] %v348_v14  ;;  %351 = vst [vmem:[%s1415_s15 + $0x68] sm:$0xff] %v350_v15  ;;  %v354_v17 = vld [vmem:[%s1410_s12 + $0x168] sm:$0xff]  ;;  %v356_v18 = vld [vmem:[%s1410_s12 + $0x180] sm:$0xff] }
  0x5c   : > { %353 = vst [vmem:[%s1415_s15 + $0x70] sm:$0xff] %v352_v16  ;;  %v358_v19 = vld [vmem:[%s1410_s12 + $0x198] sm:$0xff]  ;;  %355 = vst [vmem:[%s1415_s15 + $0x78] sm:$0xff] %v354_v17  ;;  %v360_v20 = vld [vmem:[%s1410_s12 + $0x1b0] sm:$0xff] }
  0x5d   : > { %357 = vst [vmem:[%s1415_s15 + $0x80] sm:$0xff] %v356_v18  ;;  %359 = vst [vmem:[%s1415_s15 + $0x88] sm:$0xff] %v358_v19  ;;  %v362_v21 = vld [vmem:[%s1410_s12 + $0x1c8] sm:$0xff]  ;;  %v364_v22 = vld [vmem:[%s1410_s12 + $0x1e0] sm:$0xff] }
  0x5e   : > { %361 = vst [vmem:[%s1415_s15 + $0x90] sm:$0xff] %v360_v20  ;;  %363 = vst [vmem:[%s1415_s15 + $0x98] sm:$0xff] %v362_v21  ;;  %v366_v23 = vld [vmem:[%s1410_s12 + $0x1f8] sm:$0xff]  ;;  %v368_v24 = vld [vmem:[%s1410_s12 + $0x210] sm:$0xff] }
  0x5f   : > { %365 = vst [vmem:[%s1415_s15 + $0xa0] sm:$0xff] %v364_v22  ;;  %v370_v25 = vld [vmem:[%s1410_s12 + $0x228] sm:$0xff]  ;;  %367 = vst [vmem:[%s1415_s15 + $0xa8] sm:$0xff] %v366_v23  ;;  %v372_v26 = vld [vmem:[%s1410_s12 + $0x240] sm:$0xff] }
  0x60   : > { %369 = vst [vmem:[%s1415_s15 + $0xb0] sm:$0xff] %v368_v24  ;;  %371 = vst [vmem:[%s1415_s15 + $0xb8] sm:$0xff] %v370_v25  ;;  %v374_v27 = vld [vmem:[%s1410_s12 + $0x258] sm:$0xff]  ;;  %v376_v28 = vld [vmem:[%s1410_s12 + $0x270] sm:$0xff] }
  0x61   : > { %373 = vst [vmem:[%s1415_s15 + $0xc0] sm:$0xff] %v372_v26  ;;  %375 = vst [vmem:[%s1415_s15 + $0xc8] sm:$0xff] %v374_v27  ;;  %v378_v29 = vld [vmem:[%s1410_s12 + $0x288] sm:$0xff]  ;;  %v380_v30 = vld [vmem:[%s1410_s12 + $0x2a0] sm:$0xff] }
  0x62   : > { %377 = vst [vmem:[%s1415_s15 + $0xd0] sm:$0xff] %v376_v28  ;;  %v382_v31 = vld [vmem:[%s1410_s12 + $0x2b8] sm:$0xff]  ;;  %379 = vst [vmem:[%s1415_s15 + $0xd8] sm:$0xff] %v378_v29  ;;  %v384_v32 = vld [vmem:[%s1410_s12 + $0x2d0] sm:$0xff] }
  0x63   : > { %381 = vst [vmem:[%s1415_s15 + $0xe0] sm:$0xff] %v380_v30  ;;  %383 = vst [vmem:[%s1415_s15 + $0xe8] sm:$0xff] %v382_v31  ;;  %v386_v33 = vld [vmem:[%s1410_s12 + $0x2e8] sm:$0xff] }
  0x64   : > { %385 = vst [vmem:[%s1415_s15 + $0xf0] sm:$0xff] %v384_v32  ;;  %387 = vst [vmem:[%s1415_s15 + $0xf8] sm:$0xff] %v386_v33 }
  0x65 PF: > { %393 = sbr.rel (!%p1378_p5) target bundleno = 108 (0x6c), region = 96  ;;  %s395_s26 = sand.u32 (%p1378_p5), 1, %s1203_s27  }
  0x66   : > { %s982_s19 = sshll.u32 (%p1378_p5), %s1235_s10, 4  ;;  %s931_s24 = sshll.u32 (%p1378_p5), %s395_s26, 5 }
  0x67   : > { %s400_s13 = scalar_lea.vmem (%p1378_p5), %s1593_s4, %s982_s19  ;;  %s397_s18 = scalar_lea.vmem (%p1378_p5), [#allocation8], %s931_s24 }
  0x68   : > { %v413_v34 = vld [vmem:[%s400_s13] sm:$0xff] (%p1378_p5)  ;;  %v415_v35 = vld [vmem:[%s400_s13 + $0x8] sm:$0xff] (%p1378_p5)  ;;  %v417_v36 = vld [vmem:[%s400_s13 + $0x30] sm:$0xff] (%p1378_p5) }
  0x69   : > { %414 = vst [vmem:[%s397_s18] sm:$0xff] (%p1378_p5), %v413_v34  ;;  %416 = vst [vmem:[%s397_s18 + $0x8] sm:$0xff] (%p1378_p5), %v415_v35  ;;  %v419_v37 = vld [vmem:[%s400_s13 + $0x38] sm:$0xff] (%p1378_p5) }
  0x6a   : > { %418 = vst [vmem:[%s397_s18 + $0x10] sm:$0xff] (%p1378_p5), %v417_v36  ;;  %420 = vst [vmem:[%s397_s18 + $0x18] sm:$0xff] (%p1378_p5), %v419_v37 }
  0x6c PF: > { %p934_p11 = scmp.ge.s32.totalorder %s1239_s11, 1  ;;  %p425_p12 = scmp.lt.s32.totalorder %s1239_s11, 10 }
  0x6e   : > { %p426_p13 = pnand %p934_p11, %p425_p12 }
  0x6f   : > { %s432_s14 = sand.u32 (!%p426_p13), 1, %s1215_s30   ;;  %s439_s21 = sand.u32 (!%p426_p13), 1, %s1207_s28  }
  0x70   : > { %429 = sbr.rel (%p426_p13) target bundleno = 442 (0x1ba), region = 119  ;;  %s1489_s25 = sshll.u32 (!%p426_p13), %s432_s14, 4 }
  0x71   : > { %s936_s0 = sshll.u32 (!%p426_p13), %s439_s21, 8  ;;  %s446_s20 = sand.u32 (!%p426_p13), 1, %s1199_s1  }
  0x72   : > { %s937_s22 = sshll.u32 (!%p426_p13), %s446_s20, 5  ;;  %s434_s16 = scalar_lea.vmem (!%p426_p13), [#allocation6], %s1489_s25 }
  0x73   : > { %s1493_s17 = scalar_lea.vmem (!%p426_p13), [#allocation7], %s936_s0  ;;  %s1495_s12 = scalar_lea.vmem (!%p426_p13), [#allocation8], %s937_s22 }
  0x74   : > { %s1497_s15 = scalar_lea.vmem (!%p426_p13), [#allocation9], %s937_s22  ;;  %p939_p0 = scmp.ne.s32.totalorder (!%p426_p13), %s1223_s7, 0 }
  0x77   : > { %490 = sbr.rel (%p939_p0) target bundleno = 126 (0x7e), region = 135  ;;  %v1243_v38 = vmov (!%p939_p0), 0.0  }
  0x78   : > { %491 = vst [vmem:[#allocation2] sm:$0xff] (!%p939_p0), %v1243_v38  ;;  %492 = vst [vmem:[#allocation2 + $0x8] sm:$0xff] (!%p939_p0), %v1243_v38 }
  0x79   : > { %493 = vst [vmem:[#allocation2 + $0x10] sm:$0xff] (!%p939_p0), %v1243_v38  ;;  %494 = vst [vmem:[#allocation2 + $0x18] sm:$0xff] (!%p939_p0), %v1243_v38 }
  0x7e PF: > { %s1611_s28 = sld [smem:[#allocation11_spill]] }
  0x84   : > { %s495_s30 = sld [smem:[#allocation4 + %s1611_s28]] }
  0x8a   : > { %p940_p1 = scmp.ge.s32.totalorder %s1223_s7, %s495_s30 }
  0x8b   : > { %v1076_v39 = vld [vmem:[%s1493_s17 + $0x4] ss:$8 sps:$4 sm:$0xff] (!%p940_p1)   ;;  %v1078_v40 = vld [vmem:[%s1493_s17] ss:$8 sps:$4 sm:$0xff] (!%p940_p1)   ;;  %v1079_v41 = vld [vmem:[%s1493_s17 + $0x14] ss:$8 sps:$4 sm:$0xff] (!%p940_p1)  }
  0x8c   : > { %499 = sbr.rel (%p940_p1) target bundleno = 422 (0x1a6), region = 139  ;;  %708 = vmatprep.subr.bf16.mxu0 (!%p940_p1), %v1076_v39  ;;  %v1081_v42 = vld [vmem:[%s1493_s17 + $0x10] ss:$8 sps:$4 sm:$0xff] (!%p940_p1)   ;;  %v1082_v43 = vld [vmem:[%s1493_s17 + $0x24] ss:$8 sps:$4 sm:$0xff] (!%p940_p1)  }
  0x8d   : > { %709 = vmatpush1.bf16.msra.mxu0 (!%p940_p1), %v1078_v40  ;;  %v1084_v44 = vld [vmem:[%s1493_s17 + $0x20] ss:$8 sps:$4 sm:$0xff] (!%p940_p1)   ;;  %v1085_v45 = vld [vmem:[%s1493_s17 + $0x34] ss:$8 sps:$4 sm:$0xff] (!%p940_p1)   ;;  %v1087_v46 = vld [vmem:[%s1493_s17 + $0x30] ss:$8 sps:$4 sm:$0xff] (!%p940_p1)  }
  0x8e   : > { %710 = vmatprep.subr.bf16.mxu0 (!%p940_p1), %v1079_v41  ;;  %v1088_v47 = vld [vmem:[%s1493_s17 + $0x44] ss:$8 sps:$4 sm:$0xff] (!%p940_p1)   ;;  %v1090_v48 = vld [vmem:[%s1493_s17 + $0x40] ss:$8 sps:$4 sm:$0xff] (!%p940_p1)   ;;  %v1091_v49 = vld [vmem:[%s1493_s17 + $0x54] ss:$8 sps:$4 sm:$0xff] (!%p940_p1)  }
  0x8f   : > { %v1093_v50 = vld [vmem:[%s1493_s17 + $0x50] ss:$8 sps:$4 sm:$0xff] (!%p940_p1)   ;;  %v1094_v51 = vld [vmem:[%s1493_s17 + $0x64] ss:$8 sps:$4 sm:$0xff] (!%p940_p1)   ;;  %v1096_v53 = vld [vmem:[%s1493_s17 + $0x60] ss:$8 sps:$4 sm:$0xff] (!%p940_p1)  }
  0x90   : > { %v1126_v52 = vld [vmem:[%s434_s16 + $0x4] ss:$8 sps:$4 sm:$0xff] (!%p940_p1)   ;;  %v1099_v55 = vld [vmem:[%s1493_s17 + $0x70] ss:$8 sps:$4 sm:$0xff] (!%p940_p1)   ;;  %v1102_v57 = vld [vmem:[%s1493_s17 + $0x80] ss:$8 sps:$4 sm:$0xff] (!%p940_p1)  }
  0x91   : > { %711 = vmatpush1.bf16.msra.mxu0 (!%p940_p1), %v1081_v42  ;;  %v1097_v54 = vld [vmem:[%s1493_s17 + $0x74] ss:$8 sps:$4 sm:$0xff] (!%p940_p1)   ;;  %740 = vmatprep.mubr.bf16.mxu0 (!%p940_p1), %v1126_v52  ;;  %v1100_v56 = vld [vmem:[%s1493_s17 + $0x84] ss:$8 sps:$4 sm:$0xff] (!%p940_p1)   ;;  %v1105_v59 = vld [vmem:[%s1493_s17 + $0x90] ss:$8 sps:$4 sm:$0xff] (!%p940_p1)  }
  0x92   : > { %712 = vmatprep.subr.bf16.mxu0 (!%p940_p1), %v1082_v43  ;;  %v1103_v58 = vld [vmem:[%s1493_s17 + $0x94] ss:$8 sps:$4 sm:$0xff] (!%p940_p1)   ;;  %v1106_v60 = vld [vmem:[%s1493_s17 + $0xa4] ss:$8 sps:$4 sm:$0xff] (!%p940_p1)   ;;  %v1108_v61 = vld [vmem:[%s1493_s17 + $0xa0] ss:$8 sps:$4 sm:$0xff] (!%p940_p1)  }
  0x93   : > { %v1109_v62 = vld [vmem:[%s1493_s17 + $0xb4] ss:$8 sps:$4 sm:$0xff]   ;;  %v1111_v63 = vld [vmem:[%s1493_s17 + $0xb0] ss:$8 sps:$4 sm:$0xff]   ;;  %v1112_v0 = vld [vmem:[%s1493_s17 + $0xc4] ss:$8 sps:$4 sm:$0xff]  }
  0x94   : > { %v1114_v1 = vld [vmem:[%s1493_s17 + $0xc0] ss:$8 sps:$4 sm:$0xff]   ;;  %v1115_v2 = vld [vmem:[%s1493_s17 + $0xd4] ss:$8 sps:$4 sm:$0xff]   ;;  %v1117_v3 = vld [vmem:[%s1493_s17 + $0xd0] ss:$8 sps:$4 sm:$0xff]  }
  0x95   : > { %713 = vmatpush1.bf16.msra.mxu0 %v1084_v44  ;;  %v1118_v4 = vld [vmem:[%s1493_s17 + $0xe4] ss:$8 sps:$4 sm:$0xff]   ;;  %v1120_v5 = vld [vmem:[%s1493_s17 + $0xe0] ss:$8 sps:$4 sm:$0xff]   ;;  %v1121_v6 = vld [vmem:[%s1493_s17 + $0xf4] ss:$8 sps:$4 sm:$0xff]  }
  0x96   : > { %714 = vmatprep.subr.bf16.mxu0 %v1085_v45  ;;  %v1123_v7 = vld [vmem:[%s1493_s17 + $0xf0] ss:$8 sps:$4 sm:$0xff]   ;;  %v500_v9 = vld [vmem:[#allocation2] sm:$0xff]  ;;  %v501_v10 = vld [vmem:[#allocation2 + $0x8] sm:$0xff] }
  0x97   : > { %v1124_v8 = vld [vmem:[%s434_s16] ss:$8 sps:$4 sm:$0xff]  }
  0x98   : > { %v502_v12 = vld [vmem:[#allocation2 + $0x10] sm:$0xff]  ;;  %v503_v15 = vld [vmem:[#allocation2 + $0x18] sm:$0xff] }
  0x99   : > { %715 = vmatpush1.bf16.msra.mxu0 %v1087_v46 }
  0x9a   : > { %716 = vmatprep.subr.bf16.mxu0 %v1088_v47 }
  0x9d   : > { %717 = vmatpush1.bf16.msra.mxu0 %v1090_v48 }
  0x9e   : > { %718 = vmatprep.subr.bf16.mxu0 %v1091_v49 }
  0xa1   : > { %719 = vmatpush1.bf16.msra.mxu0 %v1093_v50 }
  0xa2   : > { %720 = vmatprep.subr.bf16.mxu0 %v1094_v51 }
  0xa5   : > { %721 = vmatpush1.bf16.msra.mxu0 %v1096_v53 }
  0xa6   : > { %722 = vmatprep.subr.bf16.mxu0 %v1097_v54 }
  0xa9   : > { %723 = vmatpush1.bf16.msra.mxu0 %v1099_v55 }
  0xaa   : > { %724 = vmatprep.subr.bf16.mxu0 %v1100_v56 }
  0xad   : > { %725 = vmatpush1.bf16.msra.mxu0 %v1102_v57 }
  0xae   : > { %726 = vmatprep.subr.bf16.mxu0 %v1103_v58 }
  0xb1   : > { %727 = vmatpush1.bf16.msra.mxu0 %v1105_v59 }
  0xb2   : > { %728 = vmatprep.subr.bf16.mxu0 %v1106_v60 }
  0xb5   : > { %729 = vmatpush1.bf16.msra.mxu0 %v1108_v61 }
  0xb6   : > { %730 = vmatprep.subr.bf16.mxu0 %v1109_v62 }
  0xb9   : > { %731 = vmatpush1.bf16.msra.mxu0 %v1111_v63 }
  0xba   : > { %732 = vmatprep.subr.bf16.mxu0 %v1112_v0 }
  0xbd   : > { %733 = vmatpush1.bf16.msra.mxu0 %v1114_v1 }
  0xbe   : > { %734 = vmatprep.subr.bf16.mxu0 %v1115_v2 }
  0xc1   : > { %735 = vmatpush1.bf16.msra.mxu0 %v1117_v3 }
  0xc2   : > { %736 = vmatprep.subr.bf16.mxu0 %v1118_v4 }
  0xc5   : > { %737 = vmatpush1.bf16.msra.mxu0 %v1120_v5 }
  0xc6   : > { %738 = vmatprep.subr.bf16.mxu0 %v1121_v6 }
  0xc9   : > { %739 = vmatpush1.bf16.msra.mxu0 %v1123_v7 }
  0xcc   : > { %741 = vmatmul.mubr.bf16.vlgmr.msra.gmra.mrb[0].mxu0 %v1124_v8 }
 0x19f   : > { %v742_v11 = vpop.f32.mrb[0].mxu0 }
 0x1a0   : > { %v751_v13 = vadd.f32 %v742_v11, %v500_v9  ;;  %v744_v14 = vpop.f32.mrb[1].mxu0 }
 0x1a1   : > { %v752_v16 = vadd.f32 %v744_v14, %v501_v10  ;;  %v746_v17 = vpop.f32.mrb[2].mxu0 }
 0x1a2   : > { %755 = vst [vmem:[#allocation2] sm:$0xff] %v751_v13  ;;  %v753_v18 = vadd.f32 %v746_v17, %v502_v12  ;;  %v748_v19 = vpop.f32.mrb[3].mxu0 }
 0x1a3   : > { %756 = vst [vmem:[#allocation2 + $0x8] sm:$0xff] %v752_v16  ;;  %v754_v20 = vadd.f32 %v748_v19, %v503_v15 }
 0x1a4   : > { %757 = vst [vmem:[#allocation2 + $0x10] sm:$0xff] %v753_v18 }
 0x1a5   : > { %758 = vst [vmem:[#allocation2 + $0x18] sm:$0xff] %v754_v20 }
 0x1a6 PF: > { %p975_p2 = scmp.ne.s32.totalorder %s1223_s7, 2 }
 0x1a7   : > { %v767_v22 = vld [vmem:[%s1495_s12] sm:$0xff] (!%p975_p2)  ;;  %v768_v25 = vld [vmem:[%s1495_s12 + $0x8] sm:$0xff] (!%p975_p2)  ;;  %v769_v27 = vld [vmem:[%s1495_s12 + $0x10] sm:$0xff] (!%p975_p2) }
 0x1a8   : > { %762 = sbr.rel (%p975_p2) target bundleno = 432 (0x1b0), region = 143  ;;  %v770_v31 = vld [vmem:[%s1495_s12 + $0x18] sm:$0xff] (!%p975_p2) }
 0x1a9   : > { %v763_v21 = vld [vmem:[#allocation2] sm:$0xff] (!%p975_p2) }
 0x1aa   : > { %v764_v23 = vld [vmem:[#allocation2 + $0x8] sm:$0xff] (!%p975_p2)  ;;  %v771_v24 = vadd.f32 (!%p975_p2), %v767_v22, %v763_v21 }
 0x1ab   : > { %v765_v26 = vld [vmem:[#allocation2 + $0x10] sm:$0xff] (!%p975_p2)  ;;  %v772_v28 = vadd.f32 (!%p975_p2), %v768_v25, %v764_v23 }
 0x1ac   : > { %v773_v29 = vadd.f32 (!%p975_p2), %v769_v27, %v765_v26  ;;  %v766_v30 = vld [vmem:[#allocation2 + $0x18] sm:$0xff] (!%p975_p2)  ;;  %775 = vst [vmem:[%s1497_s15] sm:$0xff] (!%p975_p2), %v771_v24 }
 0x1ad   : > { %v774_v32 = vadd.f32 (!%p975_p2), %v770_v31, %v766_v30  ;;  %776 = vst [vmem:[%s1497_s15 + $0x8] sm:$0xff] (!%p975_p2), %v772_v28 }
 0x1ae   : > { %777 = vst [vmem:[%s1497_s15 + $0x10] sm:$0xff] (!%p975_p2), %v773_v29 }
 0x1af   : > { %778 = vst [vmem:[%s1497_s15 + $0x18] sm:$0xff] %v774_v32 }
 0x1b0 PF: > { %785 = sbr.rel (!%p1384_p7) target bundleno = 442 (0x1ba), region = 147  ;;  %s1613_s7 = sld [smem:[#allocation11_spill]] (%p1384_p7) }
 0x1b1   : > { %s1614_s5 = sld [smem:[#allocation17_spill]] (%p1384_p7) }
 0x1b4   : > { %v801_v33 = vld [vmem:[%s1497_s15] sm:$0xff] (%p1384_p7) }
 0x1b5   : > { %v803_v34 = vld [vmem:[%s1497_s15 + $0x8] sm:$0xff] (%p1384_p7) }
 0x1b6   : > { %s983_s26 = sshll.u32 (%p1384_p7), %s1613_s7, 4  ;;  %v805_v35 = vld [vmem:[%s1497_s15 + $0x10] sm:$0xff] (%p1384_p7)  ;;  %v807_v36 = vld [vmem:[%s1497_s15 + $0x18] sm:$0xff] (%p1384_p7) }
 0x1b7   : > { %s788_s9 = scalar_lea.vmem %s1614_s5, %s983_s26 }
 0x1b8   : > { %802 = vst [vmem:[%s788_s9] sm:$0xff] %v801_v33  ;;  %804 = vst [vmem:[%s788_s9 + $0x8] sm:$0xff] %v803_v34 }
 0x1b9   : > { %806 = vst [vmem:[%s788_s9 + $0x30] sm:$0xff] %v805_v35  ;;  %808 = vst [vmem:[%s788_s9 + $0x38] sm:$0xff] %v807_v36 }
 0x1ba PF: > { %s25_s11 = sadd.s32 1, %s1239_s11   ;;  %s1615_s13 = sld [smem:[#allocation15_spill]] }
 0x1bb   : > { %p22_p3 = scmp.ge.s32.totalorder %s25_s11, 11   ;;  %s1616_s7 = sld [smem:[#allocation12_spill]] }
 0x1bc   : > { %s1617_s9 = sld [smem:[#allocation13_spill]]  ;;  %s1618_s18 = sld [smem:[#allocation14_spill]] }
 0x1bd   : > { %s1619_s1 = smov %s1203_s27  ;;  %s1621_s28 = smov %s1211_s29 }
 0x1be   : > { %s1622_s29 = smov %s1392_s23  ;;  %s1623_s30 = smov %s1219_s6 }
 0x1bf   : > { %s1624_s6 = smov %s1389_s8  ;;  %s1625_s8 = smov %s1235_s10 }
 0x1c0   : > { %s1620_s27 = smov %s1615_s13  ;;  %24 = sbr.rel (!%p22_p3) target bundleno = 32 (0x20), region = 217 }
 0x1c2   : > { %s1626_s10 = smov %s1618_s18 }

</bundles_post_ra>
